<compile_context>
chip_gen: v7x
topology: tpu7x:2x2x1
jax: 0.10.0
libtpu: 0.0.40
codegen_flags: <defaults>
</compile_context>

<pallas_src>
import jax
import jax.numpy as jnp
import numpy as np
from jax.experimental import pallas as pl
from jax.experimental.pallas import tpu as pltpu


def _timestep_embed_kernel(t_ref,                                  # SMEM: [B] int32 (scalar prefetch)
                           pe_ref, w1_ref, b1_ref, w2_ref, b2_ref,  # VMEM inputs
                           o_ref,                                   # VMEM output view [B, D]
                           x_scratch):                              # VMEM scratch [B, D] f32
    """Fused: gather pe rows -> Linear -> SiLU -> Linear, one VMEM tile."""
    B = x_scratch.shape[0]

    # In-kernel gather: B dynamic single-row reads from the resident pe table.
    # B is small and static, so this unrolls into a handful of dynamic-slice loads.
    for b in range(B):
        t = t_ref[b]
        x_scratch[pl.ds(b, 1), :] = pe_ref[pl.ds(t, 1), :]

    # MXU wants bf16 operands; accumulate / bias / SiLU stay in f32.
    x = x_scratch[...].astype(jnp.bfloat16)
    h = jnp.dot(x, w1_ref[...], preferred_element_type=jnp.float32) + b1_ref[...]
    h = h * jax.nn.sigmoid(h)                                       # SiLU (sigmoid -> EUP)
    y = jnp.dot(h.astype(jnp.bfloat16), w2_ref[...],
                preferred_element_type=jnp.float32) + b2_ref[...]
    o_ref[...] = y.astype(o_ref.dtype)                              # lane-dense, unmasked vst


def timestep_embedder_forward(timesteps, pe, w1, b1, w2, b2):
    """Full TimestepEmbedder.forward, fused into one pallas_call.

    timesteps: int   [B]            (values must lie in [0, max_len); like PyTorch,
                                     indices are assumed valid -- no bounds check)
    pe:        f32   [max_len, 1, D] sinusoidal positional-encoding buffer
    w1, w2:    f32   [D, D]          pre-transposed ([in, out])
    b1, b2:    f32   [1, D]
    Returns    f32   [1, B, D]       (already permuted; layout-identical to [B,1,D])
    """
    timesteps = timesteps.astype(jnp.int32)
    B = timesteps.shape[0]
    max_len, _, D = pe.shape
    pe2d = pe.reshape(max_len, D)                        # [max_len, D], VMEM-resident
    # pe stays f32 so the per-row dynamic sublane slice is a plain 32-bit load
    # (no packed-sublane relayout); x is cast to bf16 only at the MXU boundary.
    w1b = w1.astype(jnp.bfloat16)                        # halve weight DMA, bf16 MXU
    w2b = w2.astype(jnp.bfloat16)

    cost = pl.CostEstimate(
        flops=2 * 2 * B * D * D,                         # two [B,D]x[D,D] matmuls
        transcendentals=B * D,                           # sigmoid in SiLU
        bytes_accessed=(B * 4                            # timesteps
                        + max_len * D * 4                # pe
                        + 2 * D * D * 2                  # bf16 weights
                        + 2 * D * 4                      # biases
                        + B * D * 4),                    # output
    )

    return pl.pallas_call(
        _timestep_embed_kernel,
        out_shape=jax.ShapeDtypeStruct((1, B, D), jnp.float32),
        grid_spec=pltpu.PrefetchScalarGridSpec(
            num_scalar_prefetch=1,                       # timesteps -> SMEM
            grid=(1,),
            in_specs=[
                pl.BlockSpec((max_len, D), lambda i, t: (0, 0)),   # pe (resident)
                pl.BlockSpec((D, D),       lambda i, t: (0, 0)),   # W1 bf16 [in,out]
                pl.BlockSpec((1, D),       lambda i, t: (0, 0)),   # b1
                pl.BlockSpec((D, D),       lambda i, t: (0, 0)),   # W2 bf16 [in,out]
                pl.BlockSpec((1, D),       lambda i, t: (0, 0)),   # b2
            ],
            out_specs=pl.BlockSpec((pl.Squeezed(), B, D),
                                   lambda i, t: (0, 0, 0)),        # kernel sees [B,D]
            scratch_shapes=[pltpu.VMEM((B, D), jnp.float32)],      # gathered x
        ),
        compiler_params=pltpu.CompilerParams(
            dimension_semantics=("arbitrary",)),
        cost_estimate=cost,
    )(timesteps, pe2d, w1b, b1, w2b, b2)


def make_sinusoidal_pe(max_len, d_model):
    """Standard PositionalEncoding buffer of shape [max_len, 1, d_model]."""
    assert d_model % 2 == 0, "sinusoidal PE requires an even d_model"
    pos = np.arange(max_len, dtype=np.float32)[:, None]
    div = np.exp(np.arange(0, d_model, 2, dtype=np.float32)
                 * (-np.log(10000.0) / d_model))
    pe = np.zeros((max_len, d_model), dtype=np.float32)
    pe[:, 0::2] = np.sin(pos * div)
    pe[:, 1::2] = np.cos(pos * div)
    return jnp.asarray(pe[:, None, :])  # [max_len, 1, D]


if __name__ == "__main__":
    latent_dim = 128      # lane-friendly feature dim
    max_len = 64
    batch = 8

    key = jax.random.PRNGKey(0)
    k1, k2, k3, k4, kt = jax.random.split(key, 5)

    # Deterministic parameter init (PyTorch-Linear-like uniform bound).
    bound = 1.0 / np.sqrt(latent_dim)
    w1 = jax.random.uniform(k1, (latent_dim, latent_dim), jnp.float32, -bound, bound)
    b1 = jax.random.uniform(k2, (1, latent_dim), jnp.float32, -bound, bound)
    w2 = jax.random.uniform(k3, (latent_dim, latent_dim), jnp.float32, -bound, bound)
    b2 = jax.random.uniform(k4, (1, latent_dim), jnp.float32, -bound, bound)

    pe = make_sinusoidal_pe(max_len, latent_dim)
    timesteps = jax.random.randint(kt, (batch,), 0, max_len, dtype=jnp.int32)

    out = timestep_embedder_forward(timesteps, pe, w1, b1, w2, b2)
    out = jax.block_until_ready(out)

    # Reference check in plain JAX (f32 end-to-end); bf16 weights inside the
    # kernel -> relaxed tolerance.
    x_ref = jnp.take(pe, timesteps, axis=0)                    # [B, 1, D]
    h_ref = x_ref @ w1 + b1
    h_ref = h_ref * jax.nn.sigmoid(h_ref)
    y_ref = jnp.transpose(h_ref @ w2 + b2, (1, 0, 2))          # [1, B, D]
    np.testing.assert_allclose(np.asarray(out), np.asarray(y_ref),
                               rtol=3e-2, atol=3e-2)
    assert out.shape == (1, batch, latent_dim)

    print("KERNEL_OK")
</pallas_src>

<mosaic_0001>
module attributes {stable_mosaic.version = 11 : i64} {
  func.func @_timestep_embed_kernel(%arg0: i32, %arg1: memref<8xi32, #tpu.memory_space<smem>>, %arg2: memref<64x128xf32, #tpu.memory_space<vmem>>, %arg3: memref<128x128xbf16, #tpu.memory_space<vmem>>, %arg4: memref<1x128xf32, #tpu.memory_space<vmem>>, %arg5: memref<128x128xbf16, #tpu.memory_space<vmem>>, %arg6: memref<1x128xf32, #tpu.memory_space<vmem>>, %arg7: memref<1x8x128xf32, #tpu.memory_space<vmem>>, %arg8: memref<8x128xf32, #tpu.memory_space<vmem>>) attributes {dimension_semantics = [#tpu.dimension_semantics<arbitrary>], iteration_bounds = array<i64: 1>, scalar_prefetch = 1 : i64, scratch_operands = 1 : i64, tpu.core_type = #tpu.core_type<tc>, window_params = [{pipeline_mode = #tpu.pipeline_mode<synchronous>, transform_indices = @transform_0, window_bounds = array<i64: 64, 128>}, {pipeline_mode = #tpu.pipeline_mode<synchronous>, transform_indices = @transform_1, window_bounds = array<i64: 128, 128>}, {pipeline_mode = #tpu.pipeline_mode<synchronous>, transform_indices = @transform_2, window_bounds = array<i64: 1, 128>}, {pipeline_mode = #tpu.pipeline_mode<synchronous>, transform_indices = @transform_3, window_bounds = array<i64: 128, 128>}, {pipeline_mode = #tpu.pipeline_mode<synchronous>, transform_indices = @transform_4, window_bounds = array<i64: 1, 128>}, {pipeline_mode = #tpu.pipeline_mode<synchronous>, transform_indices = @transform_5, window_bounds = array<i64: 1, 8, 128>}]} {
    %c0 = arith.constant 0 : index
    %0 = memref.load %arg1[%c0] : memref<8xi32, #tpu.memory_space<smem>>
    %1 = arith.index_cast %0 : i32 to index
    %c0_0 = arith.constant 0 : index
    %2 = vector.load %arg2[%1, %c0_0] : memref<64x128xf32, #tpu.memory_space<vmem>>, vector<1x128xf32>
    %c0_1 = arith.constant 0 : index
    %c0_2 = arith.constant 0 : index
    %3 = vector.load %arg8[%c0_1, %c0_2] : memref<8x128xf32, #tpu.memory_space<vmem>>, vector<1x128xf32>
    tpu.vector_store %arg8[%c0_1, %c0_2], %2 {strides = array<i32>} : memref<8x128xf32, #tpu.memory_space<vmem>>, vector<1x128xf32>,
    %c1 = arith.constant 1 : index
    %4 = memref.load %arg1[%c1] : memref<8xi32, #tpu.memory_space<smem>>
    %5 = arith.index_cast %4 : i32 to index
    %c0_3 = arith.constant 0 : index
    %6 = vector.load %arg2[%5, %c0_3] : memref<64x128xf32, #tpu.memory_space<vmem>>, vector<1x128xf32>
    %c1_4 = arith.constant 1 : index
    %c0_5 = arith.constant 0 : index
    %7 = vector.load %arg8[%c1_4, %c0_5] : memref<8x128xf32, #tpu.memory_space<vmem>>, vector<1x128xf32>
    tpu.vector_store %arg8[%c1_4, %c0_5], %6 {strides = array<i32>} : memref<8x128xf32, #tpu.memory_space<vmem>>, vector<1x128xf32>,
    %c2 = arith.constant 2 : index
    %8 = memref.load %arg1[%c2] : memref<8xi32, #tpu.memory_space<smem>>
    %9 = arith.index_cast %8 : i32 to index
    %c0_6 = arith.constant 0 : index
    %10 = vector.load %arg2[%9, %c0_6] : memref<64x128xf32, #tpu.memory_space<vmem>>, vector<1x128xf32>
    %c2_7 = arith.constant 2 : index
    %c0_8 = arith.constant 0 : index
    %11 = vector.load %arg8[%c2_7, %c0_8] : memref<8x128xf32, #tpu.memory_space<vmem>>, vector<1x128xf32>
    tpu.vector_store %arg8[%c2_7, %c0_8], %10 {strides = array<i32>} : memref<8x128xf32, #tpu.memory_space<vmem>>, vector<1x128xf32>,
    %c3 = arith.constant 3 : index
    %12 = memref.load %arg1[%c3] : memref<8xi32, #tpu.memory_space<smem>>
    %13 = arith.index_cast %12 : i32 to index
    %c0_9 = arith.constant 0 : index
    %14 = vector.load %arg2[%13, %c0_9] : memref<64x128xf32, #tpu.memory_space<vmem>>, vector<1x128xf32>
    %c3_10 = arith.constant 3 : index
    %c0_11 = arith.constant 0 : index
    %15 = vector.load %arg8[%c3_10, %c0_11] : memref<8x128xf32, #tpu.memory_space<vmem>>, vector<1x128xf32>
    tpu.vector_store %arg8[%c3_10, %c0_11], %14 {strides = array<i32>} : memref<8x128xf32, #tpu.memory_space<vmem>>, vector<1x128xf32>,
    %c4 = arith.constant 4 : index
    %16 = memref.load %arg1[%c4] : memref<8xi32, #tpu.memory_space<smem>>
    %17 = arith.index_cast %16 : i32 to index
    %c0_12 = arith.constant 0 : index
    %18 = vector.load %arg2[%17, %c0_12] : memref<64x128xf32, #tpu.memory_space<vmem>>, vector<1x128xf32>
    %c4_13 = arith.constant 4 : index
    %c0_14 = arith.constant 0 : index
    %19 = vector.load %arg8[%c4_13, %c0_14] : memref<8x128xf32, #tpu.memory_space<vmem>>, vector<1x128xf32>
    tpu.vector_store %arg8[%c4_13, %c0_14], %18 {strides = array<i32>} : memref<8x128xf32, #tpu.memory_space<vmem>>, vector<1x128xf32>,
    %c5 = arith.constant 5 : index
    %20 = memref.load %arg1[%c5] : memref<8xi32, #tpu.memory_space<smem>>
    %21 = arith.index_cast %20 : i32 to index
    %c0_15 = arith.constant 0 : index
    %22 = vector.load %arg2[%21, %c0_15] : memref<64x128xf32, #tpu.memory_space<vmem>>, vector<1x128xf32>
    %c5_16 = arith.constant 5 : index
    %c0_17 = arith.constant 0 : index
    %23 = vector.load %arg8[%c5_16, %c0_17] : memref<8x128xf32, #tpu.memory_space<vmem>>, vector<1x128xf32>
    tpu.vector_store %arg8[%c5_16, %c0_17], %22 {strides = array<i32>} : memref<8x128xf32, #tpu.memory_space<vmem>>, vector<1x128xf32>,
    %c6 = arith.constant 6 : index
    %24 = memref.load %arg1[%c6] : memref<8xi32, #tpu.memory_space<smem>>
    %25 = arith.index_cast %24 : i32 to index
    %c0_18 = arith.constant 0 : index
    %26 = vector.load %arg2[%25, %c0_18] : memref<64x128xf32, #tpu.memory_space<vmem>>, vector<1x128xf32>
    %c6_19 = arith.constant 6 : index
    %c0_20 = arith.constant 0 : index
    %27 = vector.load %arg8[%c6_19, %c0_20] : memref<8x128xf32, #tpu.memory_space<vmem>>, vector<1x128xf32>
    tpu.vector_store %arg8[%c6_19, %c0_20], %26 {strides = array<i32>} : memref<8x128xf32, #tpu.memory_space<vmem>>, vector<1x128xf32>,
    %c7 = arith.constant 7 : index
    %28 = memref.load %arg1[%c7] : memref<8xi32, #tpu.memory_space<smem>>
    %29 = arith.index_cast %28 : i32 to index
    %c0_21 = arith.constant 0 : index
    %30 = vector.load %arg2[%29, %c0_21] : memref<64x128xf32, #tpu.memory_space<vmem>>, vector<1x128xf32>
    %c7_22 = arith.constant 7 : index
    %c0_23 = arith.constant 0 : index
    %31 = vector.load %arg8[%c7_22, %c0_23] : memref<8x128xf32, #tpu.memory_space<vmem>>, vector<1x128xf32>
    tpu.vector_store %arg8[%c7_22, %c0_23], %30 {strides = array<i32>} : memref<8x128xf32, #tpu.memory_space<vmem>>, vector<1x128xf32>,
    %c0_24 = arith.constant 0 : index
    %c0_25 = arith.constant 0 : index
    %32 = vector.load %arg8[%c0_24, %c0_25] : memref<8x128xf32, #tpu.memory_space<vmem>>, vector<8x128xf32>
    %33 = arith.truncf %32 : vector<8x128xf32> to vector<8x128xbf16>
    %c0_26 = arith.constant 0 : index
    %c0_27 = arith.constant 0 : index
    %34 = vector.load %arg3[%c0_26, %c0_27] : memref<128x128xbf16, #tpu.memory_space<vmem>>, vector<128x128xbf16>
    %cst = arith.constant dense<0.000000e+00> : vector<8x128xf32>
    %35 = tpu.matmul %33, %34, %cst {dimension_numbers = #tpu.dot_dimension_numbers<[1], [0], [0], [1], [0, 0, 1, 1], [], []>} : vector<8x128xbf16>, vector<128x128xbf16>, vector<8x128xf32> -> vector<8x128xf32>
    %c0_28 = arith.constant 0 : index
    %c0_29 = arith.constant 0 : index
    %36 = vector.load %arg4[%c0_28, %c0_29] : memref<1x128xf32, #tpu.memory_space<vmem>>, vector<1x128xf32>
    %37 = vector.broadcast %36 : vector<1x128xf32> to vector<8x128xf32>
    %38 = arith.addf %35, %37 : vector<8x128xf32>
    %39 = arith.negf %38 : vector<8x128xf32>
    %40 = math.exp %39 : vector<8x128xf32>
    %cst_30 = arith.constant 1.000000e+00 : f32
    %41 = vector.broadcast %cst_30 : f32 to vector<8x128xf32>
    %42 = arith.addf %41, %40 : vector<8x128xf32>
    %43 = arith.divf %41, %42 : vector<8x128xf32>
    %44 = arith.mulf %38, %43 : vector<8x128xf32>
    %45 = arith.truncf %44 : vector<8x128xf32> to vector<8x128xbf16>
    %c0_31 = arith.constant 0 : index
    %c0_32 = arith.constant 0 : index
    %46 = vector.load %arg5[%c0_31, %c0_32] : memref<128x128xbf16, #tpu.memory_space<vmem>>, vector<128x128xbf16>
    %cst_33 = arith.constant dense<0.000000e+00> : vector<8x128xf32>
    %47 = tpu.matmul %45, %46, %cst_33 {dimension_numbers = #tpu.dot_dimension_numbers<[1], [0], [0], [1], [0, 0, 1, 1], [], []>} : vector<8x128xbf16>, vector<128x128xbf16>, vector<8x128xf32> -> vector<8x128xf32>
    %c0_34 = arith.constant 0 : index
    %c0_35 = arith.constant 0 : index
    %48 = vector.load %arg6[%c0_34, %c0_35] : memref<1x128xf32, #tpu.memory_space<vmem>>, vector<1x128xf32>
    %49 = vector.broadcast %48 : vector<1x128xf32> to vector<8x128xf32>
    %50 = arith.addf %47, %49 : vector<8x128xf32>
    %c0_36 = arith.constant 0 : index
    %c0_37 = arith.constant 0 : index
    %c0_38 = arith.constant 0 : index
    %51 = vector.load %arg7[%c0_36, %c0_37, %c0_38] : memref<1x8x128xf32, #tpu.memory_space<vmem>>, vector<1x8x128xf32>
    %52 = vector.shape_cast %51 : vector<1x8x128xf32> to vector<8x128xf32>
    %53 = vector.shape_cast %50 : vector<8x128xf32> to vector<1x8x128xf32>
    tpu.vector_store %arg7[%c0_36, %c0_37, %c0_38], %53 {strides = array<i32>} : memref<1x8x128xf32, #tpu.memory_space<vmem>>, vector<1x8x128xf32>,
    return
  }
  func.func @transform_0(%arg0: i32, %arg1: memref<8xi32, #tpu.memory_space<smem>>) -> (i32, i32) {
    %c0_i32 = arith.constant 0 : i32
    %c0_i32_0 = arith.constant 0 : i32
    %c0_i32_1 = arith.constant 0 : i32
    return %c0_i32, %c0_i32_0 : i32, i32
  }
  func.func @transform_1(%arg0: i32, %arg1: memref<8xi32, #tpu.memory_space<smem>>) -> (i32, i32) {
    %c0_i32 = arith.constant 0 : i32
    %c0_i32_0 = arith.constant 0 : i32
    %c0_i32_1 = arith.constant 0 : i32
    return %c0_i32, %c0_i32_0 : i32, i32
  }
  func.func @transform_2(%arg0: i32, %arg1: memref<8xi32, #tpu.memory_space<smem>>) -> (i32, i32) {
    %c0_i32 = arith.constant 0 : i32
    %c0_i32_0 = arith.constant 0 : i32
    %c0_i32_1 = arith.constant 0 : i32
    return %c0_i32, %c0_i32_0 : i32, i32
  }
  func.func @transform_3(%arg0: i32, %arg1: memref<8xi32, #tpu.memory_space<smem>>) -> (i32, i32) {
    %c0_i32 = arith.constant 0 : i32
    %c0_i32_0 = arith.constant 0 : i32
    %c0_i32_1 = arith.constant 0 : i32
    return %c0_i32, %c0_i32_0 : i32, i32
  }
  func.func @transform_4(%arg0: i32, %arg1: memref<8xi32, #tpu.memory_space<smem>>) -> (i32, i32) {
    %c0_i32 = arith.constant 0 : i32
    %c0_i32_0 = arith.constant 0 : i32
    %c0_i32_1 = arith.constant 0 : i32
    return %c0_i32, %c0_i32_0 : i32, i32
  }
  func.func @transform_5(%arg0: i32, %arg1: memref<8xi32, #tpu.memory_space<smem>>) -> (i32, i32, i32) {
    %c0_i32 = arith.constant 0 : i32
    %c0_i32_0 = arith.constant 0 : i32
    %c0_i32_1 = arith.constant 0 : i32
    %c0_i32_2 = arith.constant 0 : i32
    return %c0_i32, %c0_i32_0, %c0_i32_1 : i32, i32, i32
  }
}

</mosaic_0001>

<bundles_post_ra>
// kernel: tpu_custom_call.1
= control target key start
LH: loop header
LB: loop body
LE: loop exit
PB: predicated region body
PF: predicated region fallthrough
CT: control target
= control target key end

     0   :  { %s720_s0 = inlined_call_operand.hbm [shape: s32[8], index: 0, kind: input, shape index: {}]   ;;  %s721_s1 = inlined_call_operand.hbm [shape: f32[64,128], index: 1, kind: input, shape index: {}]   ;;  %s722_s2 = inlined_call_operand.hbm [shape: bf16[128,128], index: 2, kind: input, shape index: {}]   ;;  %s723_s3 = inlined_call_operand.vmem [shape: f32[1,128], index: 3, kind: input, shape index: {}]   ;;  %s724_s4 = inlined_call_operand.hbm [shape: bf16[128,128], index: 4, kind: input, shape index: {}]   ;;  %s725_s5 = inlined_call_operand.vmem [shape: f32[1,128], index: 5, kind: input, shape index: {}]   ;;  %s726_s6 = inlined_call_operand.hbm [shape: f32[1,8,128], index: 6, kind: output, shape index: {}]  }
   0x1   :  { %s472_s23 = scalar_lea.hbm %s720_s0, 16 }
   0x2   :  { %p473_p0 = scmp.ne.s32.totalorder %s720_s0, %s472_s23  ;;  %p476_p1 = scmp.lt.u32.totalorder %s472_s23, %s720_s0 }
   0x4   :  { %p478_p2 = pnand %p476_p1, %p473_p0 }
   0x6   :  { %481 = shalt.err (!%p478_p2)  }
   0x7   :  { %s578_s28 = smov [#allocation4]  }
   0x8   :  { %12 = dma.hbm_to_smem %s720_s0, 16, %s578_s28, [#allocation3] }
   0x9   :  { %570 = dma.done.wait [#allocation3], 16 }
   0xa   :  { %571 = vsyncadd [#allocation3], 4294967280 }
   0xb   :  { %14 = sfence }
   0xc   :  { %15 = vsyncpa [#allocation6], 0 }
   0xd   :  { %16 = vsyncpa [#allocation9], 0 }
   0xe   :  { %17 = vsyncpa [#allocation7], 0  ;;  %s579_s7 = smov [#allocation8]   ;;  %s482_s11 = scalar_lea.hbm %s722_s2, 1024 }
   0xf   :  { %s35_s8 = sshll.u32 %s579_s7, 4  ;;  %p483_p3 = scmp.ne.s32.totalorder %s722_s2, %s482_s11  ;;  %s36_s8 = int_to_ptr.vmem [resolvable:$true] %s35_s8 }
  0x10   :  { %p486_p4 = scmp.lt.u32.totalorder %s482_s11, %s722_s2 }
  0x12   :  { %p488_p5 = pnand %p486_p4, %p483_p3 }
  0x14   :  { %491 = shalt.err (!%p488_p5)
}
  0x15   :  { %s492_s0 = scalar_lea.vmem %s36_s8, 1024  ;;  %p497_p7 = scmp.lt.s32.totalorder %s36_s8, %s36_s8 }
  0x16   :  { %p493_p6 = scmp.ne.s32.totalorder %s36_s8, %s492_s0  ;;  %p498_p8 = scmp.lt.s32.totalorder %s492_s0, %s492_s0 }
  0x18   :  { %p499_p9 = por %p498_p8, %p497_p7 }
  0x1a   :  { %p500_p10 = pnand %p499_p9, %p493_p6 }
  0x1c   :  { %503 = shalt.err (!%p500_p10)
}
  0x1d   :  { %s580_s16 = smov 64   ;;  %s581_s17 = smov 4  }
  0x1e   :  { %41 = dma.hbm_to_vmem [thread:$0]  %s722_s2, 1024, %s36_s8, [#allocation9], %s580_s16, %s580_s16, %s581_s17  }
  0x1f   :  { %s582_s20 = smov [#allocation5]   ;;  %s504_s24 = scalar_lea.hbm %s721_s1, 1024 }
  0x20   :  { %s23_s21 = sshll.u32 %s582_s20, 4  ;;  %p505_p11 = scmp.ne.s32.totalorder %s721_s1, %s504_s24  ;;  %s24_s21 = int_to_ptr.vmem [resolvable:$true] %s23_s21 }
  0x21   :  { %p508_p12 = scmp.lt.u32.totalorder %s504_s24, %s721_s1 }
  0x23   :  { %p510_p13 = pnand %p508_p12, %p505_p11 }
  0x25   :  { %513 = shalt.err (!%p510_p13)
}
  0x26   :  { %s514_s29 = scalar_lea.vmem %s24_s21, 1024  ;;  %p519_p1 = scmp.lt.s32.totalorder %s24_s21, %s24_s21 }
  0x27   :  { %p515_p0 = scmp.ne.s32.totalorder %s24_s21, %s514_s29  ;;  %p520_p2 = scmp.lt.s32.totalorder %s514_s29, %s514_s29 }
  0x29   :  { %p521_p3 = por %p520_p2, %p519_p1 }
  0x2b   :  { %p522_p4 = pnand %p521_p3, %p515_p0 }
  0x2d   :  { %525 = shalt.err (!%p522_p4)
}
  0x2e   :  { %s583_s2 = smov 128   ;;  %s584_s30 = smov 8  }
  0x2f   :  { %29 = dma.hbm_to_vmem [thread:$0]  %s721_s1, 1024, %s24_s21, [#allocation6], %s583_s2, %s583_s2, %s584_s30  }
  0x30   :  { %s585_s9 = smov [#allocation10]   ;;  %s526_s13 = scalar_lea.hbm %s724_s4, 1024 }
  0x31   :  { %s49_s10 = sshll.u32 %s585_s9, 4  ;;  %p527_p5 = scmp.ne.s32.totalorder %s724_s4, %s526_s13  ;;  %s50_s10 = int_to_ptr.vmem [resolvable:$true] %s49_s10 }
  0x32   :  { %p530_p6 = scmp.lt.u32.totalorder %s526_s13, %s724_s4 }
  0x34   :  { %p532_p7 = pnand %p530_p6, %p527_p5 }
  0x36   :  { %535 = shalt.err (!%p532_p7)
}
  0x37   :  { %s536_s19 = scalar_lea.vmem %s50_s10, 1024  ;;  %p541_p9 = scmp.lt.s32.totalorder %s50_s10, %s50_s10 }
  0x38   :  { %p537_p8 = scmp.ne.s32.totalorder %s50_s10, %s536_s19  ;;  %p542_p10 = scmp.lt.s32.totalorder %s536_s19, %s536_s19 }
  0x3a   :  { %p543_p11 = por %p542_p10, %p541_p9 }
  0x3c   :  { %p544_p12 = pnand %p543_p11, %p537_p8 }
  0x3e   :  { %547 = shalt.err (!%p544_p12)
}
  0x3f   :  { %55 = dma.hbm_to_vmem [thread:$0]  %s724_s4, 1024, %s50_s10, [#allocation9], %s580_s16, %s580_s16, %s581_s17  }
  0x40   :  { %572 = dma.done.wait [#allocation6], 1024  }
  0x41   :  { %573 = vsyncadd [#allocation6], 4294966272 }
  0x42   :  { %574 = dma.done.wait [#allocation9], 2048  }
  0x43   :  { %575 = vsyncadd [#allocation9], 4294965248  ;;  %v586_v0 = vmov 0.0   ;;  %vm587_vm0 = vmmov 0   ;;  %s68_s21 = sld [smem:[#allocation4]]  ;;  %s357_s22 = sld [smem:[#allocation4 + $0x1]] }
  0x44   :  { %401 = vmatprep.subr.bf16.mxu0 %v586_v0  ;;  %417 = vmatprep.mubr.msk.bf16.mxu0 %vm587_vm0, %v586_v0  ;;  %s358_s23 = sld [smem:[#allocation4 + $0x2]]  ;;  %s359_s24 = sld [smem:[#allocation4 + $0x3]]  ;;  %v452_v1 = vld [vmem:[#allocation8] sm:$0xff]   ;;  %v453_v2 = vld [vmem:[#allocation8 + $0x8] sm:$0xff]   ;;  %v454_v3 = vld [vmem:[#allocation8 + $0x10] sm:$0xff]  }
  0x45   :  { %421 = vmatprep.subr.bf16.mxu1 %v586_v0  ;;  %437 = vmatprep.mubr.msk.bf16.mxu1 %vm587_vm0, %v586_v0  ;;  %s360_s25 = sld [smem:[#allocation4 + $0x4]]  ;;  %s361_s4 = sld [smem:[#allocation4 + $0x5]]  ;;  %v455_v10 = vld [vmem:[#allocation8 + $0x18] sm:$0xff]   ;;  %v456_v13 = vld [vmem:[#allocation8 + $0x20] sm:$0xff]   ;;  %v457_v14 = vld [vmem:[#allocation8 + $0x28] sm:$0xff]  }
  0x46   :  { %s682_s16 = sld [smem:[#allocation4 + $0x6]]  ;;  %s684_s17 = sld [smem:[#allocation4 + $0x7]]  ;;  %402 = vmatpush3.bf16.msra.mxu0 %v452_v1  ;;  %v458_v15 = vld [vmem:[#allocation8 + $0x30] sm:$0xff]   ;;  %v459_v16 = vld [vmem:[#allocation8 + $0x38] sm:$0xff]   ;;  %v460_v19 = vld [vmem:[#allocation10] sm:$0xff]  }
  0x47   :  { %403 = vmatprep.subr.bf16.mxu0 %v586_v0  ;;  %422 = vmatpush3.bf16.msra.mxu1 %v460_v19  ;;  %v461_v20 = vld [vmem:[#allocation10 + $0x8] sm:$0xff]   ;;  %v462_v21 = vld [vmem:[#allocation10 + $0x10] sm:$0xff]   ;;  %v463_v22 = vld [vmem:[#allocation10 + $0x18] sm:$0xff]   ;;  %s588_s13 = smov [#allocation11]  }
  0x48   :  { %423 = vmatprep.subr.bf16.mxu1 %v586_v0  ;;  %v464_v23 = vld [vmem:[#allocation10 + $0x20] sm:$0xff]   ;;  %v465_v24 = vld [vmem:[#allocation10 + $0x28] sm:$0xff]   ;;  %v466_v25 = vld [vmem:[#allocation10 + $0x30] sm:$0xff]  }
  0x49   :  { %s69_s26 = scalar_lea.vmem [#allocation5], %s68_s21  ;;  %s73_s27 = scalar_lea.vmem [#allocation5], %s357_s22  ;;  %v467_v26 = vld [vmem:[#allocation10 + $0x38] sm:$0xff]  }
  0x4a   :  { %404 = vmatpush3.bf16.msra.mxu0 %v453_v2  ;;  %v70_v4 = vld [vmem:[%s69_s26] sm:$0x1]  ;;  %s77_s28 = scalar_lea.vmem [#allocation5], %s358_s23  ;;  %s81_s29 = scalar_lea.vmem [#allocation5], %s359_s24 }
  0x4b   :  { %405 = vmatprep.subr.bf16.mxu0 %v586_v0  ;;  %v74_v5 = vld [vmem:[%s73_s27] sm:$0x1]  ;;  %71 = vst [vmem:[#allocation2] sm:$0x1] %v70_v4  ;;  %s85_s2 = scalar_lea.vmem [#allocation5], %s360_s25  ;;  %s89_s30 = scalar_lea.vmem [#allocation5], %s361_s4  ;;  %424 = vmatpush3.bf16.msra.mxu1 %v461_v20 }
  0x4c   :  { %v78_v6 = vld [vmem:[%s77_s28] sm:$0x1]  ;;  %75 = vst [vmem:[#allocation2 + $0x1] sm:$0x1] %v74_v5  ;;  %s93_s7 = scalar_lea.vmem [#allocation5], %s682_s16  ;;  %s97_s8 = scalar_lea.vmem [#allocation5], %s684_s17  ;;  %425 = vmatprep.subr.bf16.mxu1 %v586_v0 }
  0x4d   :  { %79 = vst [vmem:[#allocation2 + $0x2] sm:$0x1] %v78_v6  ;;  %v82_v7 = vld [vmem:[%s81_s29] sm:$0x1] }
  0x4e   :  { %v86_v8 = vld [vmem:[%s85_s2] sm:$0x1]  ;;  %406 = vmatpush3.bf16.msra.mxu0 %v454_v3  ;;  %83 = vst [vmem:[#allocation2 + $0x3] sm:$0x1] %v82_v7 }
  0x4f   :  { %v90_v9 = vld [vmem:[%s89_s30] sm:$0x1]  ;;  %87 = vst [vmem:[#allocation2 + $0x4] sm:$0x1] %v86_v8  ;;  %407 = vmatprep.subr.bf16.mxu0 %v586_v0  ;;  %426 = vmatpush3.bf16.msra.mxu1 %v462_v21 }
  0x50   :  { %91 = vst [vmem:[#allocation2 + $0x5] sm:$0x1] %v90_v9  ;;  %v94_v11 = vld [vmem:[%s93_s7] sm:$0x1]  ;;  %427 = vmatprep.subr.bf16.mxu1 %v586_v0 }
  0x51   :  { %v98_v12 = vld [vmem:[%s97_s8] sm:$0x1]  ;;  %95 = vst [vmem:[#allocation2 + $0x6] sm:$0x1] %v94_v11 }
  0x52   :  { %99 = vst [vmem:[#allocation2 + $0x7] sm:$0x1] %v98_v12  ;;  %408 = vmatpush3.bf16.msra.mxu0 %v455_v10  ;;  %v364_v27 = vld [vmem:[%s723_s3] ss:$0 sm:$0xff]  ;;  %s339_s3 = sshll.u32 %s588_s13, 4  ;;  %s340_s3 = int_to_ptr.vmem [resolvable:$true] %s339_s3 }
  0x53   :  { %409 = vmatprep.subr.bf16.mxu0 %v586_v0  ;;  %428 = vmatpush3.bf16.msra.mxu1 %v463_v22  ;;  %v374_v39 = vld [vmem:[%s725_s5] ss:$0 sm:$0xff]  ;;  %s548_s14 = scalar_lea.vmem %s340_s3, 128  ;;  %p553_p0 = scmp.lt.s32.totalorder %s340_s3, %s340_s3 }
  0x54   :  { %429 = vmatprep.subr.bf16.mxu1 %v586_v0  ;;  %p549_p13 = scmp.ne.s32.totalorder %s340_s3, %s548_s14  ;;  %p554_p1 = scmp.lt.s32.totalorder %s548_s14, %s548_s14 }
  0x56   :  { %410 = vmatpush3.bf16.msra.mxu0 %v456_v13  ;;  %p555_p2 = por %p554_p1, %p553_p0 }
  0x57   :  { %411 = vmatprep.subr.bf16.mxu0 %v586_v0  ;;  %430 = vmatpush3.bf16.msra.mxu1 %v464_v23 }
  0x58   :  { %431 = vmatprep.subr.bf16.mxu1 %v586_v0  ;;  %p556_p3 = pnand %p555_p2, %p549_p13 }
  0x59   :  { %v100_v17 = vld [vmem:[#allocation2] sm:$0xff] }
  0x5a   :  { %412 = vmatpush3.bf16.msra.mxu0 %v457_v14  ;;  %v101_v18 = vpack.c.bf16 %v100_v17, %v100_v17 }
  0x5b   :  { %413 = vmatprep.subr.bf16.mxu0 %v586_v0  ;;  %432 = vmatpush3.bf16.msra.mxu1 %v465_v24 }
  0x5c   :  { %433 = vmatprep.subr.bf16.mxu1 %v586_v0 }
  0x5e   :  { %414 = vmatpush3.bf16.msra.mxu0 %v458_v15 }
  0x5f   :  { %415 = vmatprep.subr.bf16.mxu0 %v586_v0  ;;  %434 = vmatpush3.bf16.msra.mxu1 %v466_v25 }
  0x60   :  { %435 = vmatprep.subr.bf16.mxu1 %v586_v0 }
  0x62   :  { %416 = vmatpush3.bf16.msra.mxu0 %v459_v16 }
  0x63   :  { %436 = vmatpush3.bf16.msra.mxu1 %v467_v26 }
  0x65   :  { %418 = vmatmul.mubr.bf16.vlgmr.msra.gmra.mrb[0].mxu0 %v101_v18 }
 0x138   :  { %v207_v28 = vpop.f32.mrb[0].mxu0 }
 0x139   :  { %v208_v29 = vadd.f32 %v364_v27, %v207_v28  ;;  %v419_v30 = vpop.f32.mrb[1].mxu0 }
 0x13a   :  { %v210_v31 = vpop.f32.mrb[2].mxu0 }
 0x13b   :  { %v373_v32 = vmul.f32 -1.442695, %v208_v29  ;;  %v420_v33 = vpop.f32.mrb[3].mxu0 }
 0x13d   :  { %468 = vpow2.f32 %v373_v32 }
 0x147   :  { %v469_v34 = vpop.eup %468 }
 0x148   :  { %v216_v35 = vadd.f32 1.0, %v469_v34 }
 0x14a   :  { %470 = vrcp.f32 %v216_v35 }
 0x154   :  { %v471_v36 = vpop.eup %470 }
 0x155   :  { %v219_v37 = vmul.f32 %v471_v36, %v208_v29 }
 0x157   :  { %v220_v38 = vpack.c.bf16 %v219_v37, %v219_v37 }
 0x159   :  { %438 = vmatmul.mubr.bf16.vlgmr.msra.gmra.mrb[0].mxu1 %v220_v38 }
 0x22c   :  { %v326_v40 = vpop.f32.mrb[0].mxu1 }
 0x22d   :  { %v327_v41 = vadd.f32 %v374_v39, %v326_v40  ;;  %v439_v42 = vpop.f32.mrb[1].mxu1 }
 0x22e   :  { %v329_v43 = vpop.f32.mrb[2].mxu1 }
 0x22f   :  { %332 = vst [vmem:[#allocation11] sm:$0xff] %v327_v41  ;;  %v440_v44 = vpop.f32.mrb[3].mxu1 }
 0x230   :  { %559 = shalt.err (!%p556_p3)
}
 0x231   :  { %s560_s5 = scalar_lea.hbm %s726_s6, 128 }
 0x232   :  { %p561_p4 = scmp.ne.s32.totalorder %s726_s6, %s560_s5  ;;  %p564_p5 = scmp.lt.u32.totalorder %s560_s5, %s726_s6 }
 0x234   :  { %p566_p6 = pnand %p564_p5, %p561_p4 }
 0x236   :  { %569 = shalt.err (!%p566_p6)
}
 0x237   :  { %342 = dma.vmem_to_hbm [thread:$0]  %s340_s3, 128, %s726_s6, [#allocation7]  }
 0x238   :  { %576 = dma.done.wait [#allocation7], 128  }
 0x239   :  { %577 = vsyncadd [#allocation7], 4294967168 }
 0x23a   :  { %346 = vsyncpa [#allocation6], 1 }
 0x23b   :  { %347 = vsyncpa [#allocation9], 1 }
 0x23c   :  { %348 = vsyncpa [#allocation7], 1 }

</bundles_post_ra>
